<compile_context>
chip_gen: v7x
topology: tpu7x:2x2x1
jax: 0.10.0
libtpu: 0.0.40
codegen_flags: <defaults>
</compile_context>

<pallas_src>
import jax
import jax.numpy as jnp
from jax.experimental import pallas as pl
from jax.experimental.pallas import tpu as pltpu


def _stats_loss_kernel(scal_ref, x_ref, y_ref, o_ref):
    # scal_ref : (2,)  f32 SMEM  = [1/x_max, 1/y_max]
    # x_ref/y_ref: (1, C, TR, 128) VMEM blocks in the *native* input dtype
    # o_ref    : (1, 128) f32 lane-dense partial sum for this grid step
    x = x_ref[0].astype(jnp.float32)          # (C, TR, 128) upcast in-kernel
    y = y_ref[0].astype(jnp.float32)
    C = x.shape[0]
    eps = 1e-5
    inv_c = 1.0 / C
    inv_cm1 = 1.0 / (C - 1)                   # torch .var(dim) is unbiased
    inv_xmax = scal_ref[0]
    inv_ymax = scal_ref[1]

    def calc_stats(f):
        # Single pass over channels: sum + sum-of-squares (VPU adds only).
        s = jnp.sum(f, axis=0)                # (TR, 128)
        ss = jnp.sum(f * f, axis=0)
        mean = s * inv_c
        var = (ss - C * mean * mean) * inv_cm1 + eps
        std = jnp.sqrt(var)
        return mean, std, var

    xm, xs, xv = calc_stats(x)
    ym, ys, yv = calc_stats(y)

    # softplus with torch defaults (beta=1, threshold=20 -> linear above).
    # Both jnp.where branches are evaluated; exp saturates to +inf (not NaN)
    # on the discarded branch, which is safe.
    z = xm * inv_xmax - ym * inv_ymax
    softplus = jnp.where(z > 20.0, z, jnp.log1p(jnp.exp(z)))
    mean_loss = softplus * softplus

    # TODO(synk): torch.log1m does not exist in PyTorch (reference would
    # crash); interpreted as log1p. exp(xs)*exp(ys) is folded to exp(xs+ys)
    # (same value, one fewer EUP exp, narrower overflow window).
    sp = jnp.log1p(jnp.exp(xs + ys))
    std_loss = sp * sp
    var_loss = jnp.log(jnp.abs(xv - yv))

    loss = jnp.sqrt(mean_loss - var_loss * pl.reciprocal(std_loss, approx=True))
    # Lane-dense partial sum (sublane reduce) for this (n, tile) block.
    o_ref[...] = jnp.sum(loss, axis=0, keepdims=True)      # (1, 128)


def _pick_tile_rows(R, C, itemsize):
    """How many 128-lane pixel rows per block.

    Target ~2 MiB per input block: big enough to amortize per-step overhead,
    small enough that 2 inputs x 2 pipeline buffers fit every chip's default
    scoped VMEM (16 MiB on v5e, 32 MiB on v6e/v7x).
    """
    cap = max(8, (2 * 1024 * 1024) // (C * 128 * itemsize))
    if R <= cap:
        return R
    t = (cap // 8) * 8
    while t >= 8:
        if R % t == 0:
            return t
        t -= 8
    # Fallback: full extent (always layout-legal; may use more VMEM).
    return R


def stats_loss(x, y, dim=1):
    """x, y: NCHW arrays (any float dtype). Returns scalar float32 loss."""
    assert dim == 1, "kernel is specialized for dim=1 (channel) statistics"
    assert y.shape == x.shape
    N, C, H, W = x.shape
    assert C > 1, "unbiased variance requires C > 1"
    P = H * W
    # TODO(synk): H*W not a multiple of 128 would need lane masking on the
    # last tile; not implemented.
    assert P % 128 == 0, "H*W must be a multiple of 128"
    R = P // 128
    itemsize = jnp.dtype(x.dtype).itemsize
    TR = _pick_tile_rows(R, C, itemsize)
    T = R // TR

    # Free views: no transpose, no dtype cast (upcast happens inside kernel).
    x4 = x.reshape(N, C, R, 128)
    y4 = y.reshape(N, C, R, 128)

    # Global max is the only cross-tile dependency: hoist it to a cheap fused
    # XLA reduce and pass 1/max as SMEM scalars to the streaming kernel.
    inv_max = jnp.stack([
        1.0 / jnp.max(x).astype(jnp.float32),
        1.0 / jnp.max(y).astype(jnp.float32),
    ])

    partials = pl.pallas_call(
        _stats_loss_kernel,
        out_shape=jax.ShapeDtypeStruct((1, N * T * 128), jnp.float32),
        grid=(N, T),
        in_specs=[
            pl.BlockSpec(memory_space=pltpu.MemorySpace.SMEM),          # scalars
            pl.BlockSpec((1, C, TR, 128), lambda n, t: (n, 0, t, 0)),   # x tile
            pl.BlockSpec((1, C, TR, 128), lambda n, t: (n, 0, t, 0)),   # y tile
        ],
        out_specs=pl.BlockSpec((1, 128), lambda n, t: (0, n * T + t)),
        compiler_params=pltpu.CompilerParams(
            dimension_semantics=("parallel", "parallel")),
    )(inv_max, x4, y4)

    # Final scalar mean over all N*H*W per-pixel losses.
    return jnp.sum(partials) / (N * P)


if __name__ == "__main__":
    key = jax.random.PRNGKey(0)
    kx, ky = jax.random.split(key)
    # Small shapes consistent with the module: batch=2, channels=4, spatial=16.
    x = jax.random.normal(kx, (2, 4, 16, 16), dtype=jnp.float32)
    y = jax.random.normal(ky, (2, 4, 16, 16), dtype=jnp.float32)

    loss = stats_loss(x, y, dim=1)
    jax.block_until_ready(loss)
    print("KERNEL_OK")
</pallas_src>

<mosaic_0001>
module attributes {stable_mosaic.version = 11 : i64} {
  func.func @_stats_loss_kernel(%arg0: i32, %arg1: i32, %arg2: memref<2xf32, #tpu.memory_space<smem>>, %arg3: memref<1x4x2x128xf32, #tpu.memory_space<vmem>>, %arg4: memref<1x4x2x128xf32, #tpu.memory_space<vmem>>, %arg5: memref<1x128xf32, #tpu.memory_space<vmem>>) attributes {dimension_semantics = [#tpu.dimension_semantics<parallel>, #tpu.dimension_semantics<parallel>], iteration_bounds = array<i64: 2, 1>, scalar_prefetch = 0 : i64, scratch_operands = 0 : i64, tpu.core_type = #tpu.core_type<tc>, window_params = [{transform_indices = @transform_0, window_bounds = array<i64: 2>}, {transform_indices = @transform_1, window_bounds = array<i64: 1, 4, 2, 128>}, {transform_indices = @transform_2, window_bounds = array<i64: 1, 4, 2, 128>}, {transform_indices = @transform_3, window_bounds = array<i64: 1, 128>}]} {
    %c0 = arith.constant 0 : index
    %c0_0 = arith.constant 0 : index
    %c0_1 = arith.constant 0 : index
    %c0_2 = arith.constant 0 : index
    %0 = vector.load %arg3[%c0, %c0_0, %c0_1, %c0_2] : memref<1x4x2x128xf32, #tpu.memory_space<vmem>>, vector<1x4x2x128xf32>
    %1 = vector.shape_cast %0 : vector<1x4x2x128xf32> to vector<4x2x128xf32>
    %c0_3 = arith.constant 0 : index
    %c0_4 = arith.constant 0 : index
    %c0_5 = arith.constant 0 : index
    %c0_6 = arith.constant 0 : index
    %2 = vector.load %arg4[%c0_3, %c0_4, %c0_5, %c0_6] : memref<1x4x2x128xf32, #tpu.memory_space<vmem>>, vector<1x4x2x128xf32>
    %3 = vector.shape_cast %2 : vector<1x4x2x128xf32> to vector<4x2x128xf32>
    %c0_7 = arith.constant 0 : index
    %4 = memref.load %arg2[%c0_7] : memref<2xf32, #tpu.memory_space<smem>>
    %c1 = arith.constant 1 : index
    %5 = memref.load %arg2[%c1] : memref<2xf32, #tpu.memory_space<smem>>
    %cst = arith.constant dense<0.000000e+00> : vector<2x128xf32>
    %6 = vector.multi_reduction <add>, %1, %cst [0] : vector<4x2x128xf32> to vector<2x128xf32>
    %7 = arith.mulf %1, %1 : vector<4x2x128xf32>
    %cst_8 = arith.constant dense<0.000000e+00> : vector<2x128xf32>
    %8 = vector.multi_reduction <add>, %7, %cst_8 [0] : vector<4x2x128xf32> to vector<2x128xf32>
    %cst_9 = arith.constant 2.500000e-01 : f32
    %9 = vector.broadcast %cst_9 : f32 to vector<2x128xf32>
    %10 = arith.mulf %6, %9 : vector<2x128xf32>
    %cst_10 = arith.constant 4.000000e+00 : f32
    %11 = vector.broadcast %cst_10 : f32 to vector<2x128xf32>
    %12 = arith.mulf %11, %10 : vector<2x128xf32>
    %13 = arith.mulf %12, %10 : vector<2x128xf32>
    %14 = arith.subf %8, %13 : vector<2x128xf32>
    %cst_11 = arith.constant 0.333333343 : f32
    %15 = vector.broadcast %cst_11 : f32 to vector<2x128xf32>
    %16 = arith.mulf %14, %15 : vector<2x128xf32>
    %cst_12 = arith.constant 9.99999974E-6 : f32
    %17 = vector.broadcast %cst_12 : f32 to vector<2x128xf32>
    %18 = arith.addf %16, %17 : vector<2x128xf32>
    %19 = math.sqrt %18 : vector<2x128xf32>
    %cst_13 = arith.constant dense<0.000000e+00> : vector<2x128xf32>
    %20 = vector.multi_reduction <add>, %3, %cst_13 [0] : vector<4x2x128xf32> to vector<2x128xf32>
    %21 = arith.mulf %3, %3 : vector<4x2x128xf32>
    %cst_14 = arith.constant dense<0.000000e+00> : vector<2x128xf32>
    %22 = vector.multi_reduction <add>, %21, %cst_14 [0] : vector<4x2x128xf32> to vector<2x128xf32>
    %cst_15 = arith.constant 2.500000e-01 : f32
    %23 = vector.broadcast %cst_15 : f32 to vector<2x128xf32>
    %24 = arith.mulf %20, %23 : vector<2x128xf32>
    %cst_16 = arith.constant 4.000000e+00 : f32
    %25 = vector.broadcast %cst_16 : f32 to vector<2x128xf32>
    %26 = arith.mulf %25, %24 : vector<2x128xf32>
    %27 = arith.mulf %26, %24 : vector<2x128xf32>
    %28 = arith.subf %22, %27 : vector<2x128xf32>
    %cst_17 = arith.constant 0.333333343 : f32
    %29 = vector.broadcast %cst_17 : f32 to vector<2x128xf32>
    %30 = arith.mulf %28, %29 : vector<2x128xf32>
    %cst_18 = arith.constant 9.99999974E-6 : f32
    %31 = vector.broadcast %cst_18 : f32 to vector<2x128xf32>
    %32 = arith.addf %30, %31 : vector<2x128xf32>
    %33 = math.sqrt %32 : vector<2x128xf32>
    %34 = vector.broadcast %4 : f32 to vector<2x128xf32>
    %35 = arith.mulf %10, %34 : vector<2x128xf32>
    %36 = vector.broadcast %5 : f32 to vector<2x128xf32>
    %37 = arith.mulf %24, %36 : vector<2x128xf32>
    %38 = arith.subf %35, %37 : vector<2x128xf32>
    %cst_19 = arith.constant 2.000000e+01 : f32
    %39 = vector.broadcast %cst_19 : f32 to vector<2x128xf32>
    %40 = arith.cmpf ogt, %38, %39 : vector<2x128xf32>
    %41 = math.exp %38 : vector<2x128xf32>
    %42 = math.log1p %41 : vector<2x128xf32>
    %43 = arith.select %40, %38, %42 : vector<2x128xi1>, vector<2x128xf32>
    %44 = arith.mulf %43, %43 : vector<2x128xf32>
    %45 = arith.addf %19, %33 : vector<2x128xf32>
    %46 = math.exp %45 : vector<2x128xf32>
    %47 = math.log1p %46 : vector<2x128xf32>
    %48 = arith.mulf %47, %47 : vector<2x128xf32>
    %49 = arith.subf %18, %32 : vector<2x128xf32>
    %50 = math.absf %49 : vector<2x128xf32>
    %51 = math.log %50 : vector<2x128xf32>
    %52 = tpu.reciprocal %48 {approx = true} : vector<2x128xf32> -> vector<2x128xf32>
    %53 = arith.mulf %51, %52 : vector<2x128xf32>
    %54 = arith.subf %44, %53 : vector<2x128xf32>
    %55 = math.sqrt %54 : vector<2x128xf32>
    %cst_20 = arith.constant dense<0.000000e+00> : vector<128xf32>
    %56 = vector.multi_reduction <add>, %55, %cst_20 [0] : vector<2x128xf32> to vector<128xf32>
    %57 = vector.shape_cast %56 : vector<128xf32> to vector<1x128xf32>
    %c0_21 = arith.constant 0 : index
    %c0_22 = arith.constant 0 : index
    %58 = vector.load %arg5[%c0_21, %c0_22] : memref<1x128xf32, #tpu.memory_space<vmem>>, vector<1x128xf32>
    tpu.vector_store %arg5[%c0_21, %c0_22], %57 {strides = array<i32>} : memref<1x128xf32, #tpu.memory_space<vmem>>, vector<1x128xf32>,
    return
  }
  func.func @transform_0(%arg0: i32, %arg1: i32) -> i32 {
    %c0_i32 = arith.constant 0 : i32
    %c0_i32_0 = arith.constant 0 : i32
    return %c0_i32 : i32
  }
  func.func @transform_1(%arg0: i32, %arg1: i32) -> (i32, i32, i32, i32) {
    %c0_i32 = arith.constant 0 : i32
    %c0_i32_0 = arith.constant 0 : i32
    %c0_i32_1 = arith.constant 0 : i32
    return %arg0, %c0_i32, %arg1, %c0_i32_0 : i32, i32, i32, i32
  }
  func.func @transform_2(%arg0: i32, %arg1: i32) -> (i32, i32, i32, i32) {
    %c0_i32 = arith.constant 0 : i32
    %c0_i32_0 = arith.constant 0 : i32
    %c0_i32_1 = arith.constant 0 : i32
    return %arg0, %c0_i32, %arg1, %c0_i32_0 : i32, i32, i32, i32
  }
  func.func @transform_3(%arg0: i32, %arg1: i32) -> (i32, i32) {
    %c1_i32 = arith.constant 1 : i32
    %0 = arith.muli %arg0, %c1_i32 : i32
    %1 = arith.addi %0, %arg1 : i32
    %c0_i32 = arith.constant 0 : i32
    %c0_i32_0 = arith.constant 0 : i32
    return %c0_i32, %1 : i32, i32
  }
}

</mosaic_0001>

<bundles_post_ra>
// kernel: tpu_custom_call.1
= control target key start
LH: loop header
LB: loop body
LE: loop exit
PB: predicated region body
PF: predicated region fallthrough
CT: control target
= control target key end

     0   :  { %s1098_s0 = inlined_call_operand.hbm [shape: f32[2], index: 0, kind: input, shape index: {}]   ;;  %s1099_s1 = inlined_call_operand.hbm [shape: f32[2,4,2,128], index: 1, kind: input, shape index: {}]   ;;  %s1100_s2 = inlined_call_operand.hbm [shape: f32[2,4,2,128], index: 2, kind: input, shape index: {}]   ;;  %s1101_s3 = inlined_call_operand.hbm [shape: f32[1,256], index: 3, kind: output, shape index: {}]  }
   0x1   :  { %1106 = sst [smem:[#allocation14_spill]] %s1098_s0 }
   0x2   :  { %1107 = sst [smem:[#allocation15_spill]] %s1099_s1 }
   0x3   :  { %8 = vsyncpa [#allocation5], 0 }
   0x4   :  { %9 = vsyncpa [#allocation3], 0 }
   0x5   :  { %11 = vsyncpa [#allocation3 + $0x1], 0 }
   0x6   :  { %12 = vsyncpa [#allocation8], 0 }
   0x7   :  { %14 = vsyncpa [#allocation8 + $0x1], 0 }
   0x8   :  { %15 = vsyncpa [#allocation4], 0 }
   0x9   :  { %17 = vsyncpa [#allocation4 + $0x1], 0  ;;  %s826_s12 = smov 0   ;;  %s828_s13 = smov 0  }
   0xa   :  { %s830_s14 = smov 0   ;;  %s832_s15 = smov 0  }
   0xb   :  { %s834_s16 = smov 0   ;;  %s836_s17 = smov 0  }
   0xc LB: > { %s516_s18 = sadd.s32 4294967295, %s798_s17   ;;  %s517_s19 = sadd.s32 4294967294, %s798_s17   ;;  %s798_s17 = sphi %s836_s17, %s23_s17   ;;  %s794_s16 = sphi %s834_s16, %s1125_s16   ;;  %s790_s15 = sphi %s832_s15, %s1124_s15   ;;  %s786_s14 = sphi %s830_s14, %s1123_s14   ;;  %s782_s13 = sphi %s828_s13, %s1122_s13   ;;  %s778_s12 = sphi %s826_s12, %s1121_s12  }
   0xd   : > { %s65_s20 = sadd.s32 1, %s786_s14  ;;  %p72_p0 = scmp.ne.s32.totalorder %s786_s14, %s782_s13 }
   0xe   : > { %p73_p1 = scmp.eq.s32.totalorder %s798_s17, 0  ;;  %p78_p2 = scmp.ne.s32.totalorder %s782_s13, %s778_s12 }
   0xf   : > { %p864_p3 = scmp.eq.s32.totalorder %s516_s18, 0  ;;  %p132_p4 = scmp.eq.s32.totalorder %s516_s18, 1 }
  0x10   : > { %p74_p5 = por %p73_p1, %p72_p0  ;;  %p138_p6 = scmp.eq.s32.totalorder %s517_s19, 1 }
  0x11   : > { %s1108_s21 = scalar_select %p864_p3, 1, 0 }
  0x12   : > { %p870_p7 = por %p864_p3, %p78_p2  ;;  %p874_p8 = por %p132_p4, %p72_p0 }
  0x13   : > { %p878_p9 = por %p138_p6, %p78_p2  ;;  %p518_p10 = scmp.ge.s32.totalorder %s798_s17, 1 }
  0x14   : > { %s1109_s22 = scalar_select %p870_p7, 1, 0 }
  0x15   : > { %s1110_s23 = scalar_select %p874_p8, 1, 0 }
  0x16   : > { %s1111_s24 = scalar_select %p878_p9, 1, 0 }
  0x17   : > { %p145_p11 = scmp.lt.s32.totalorder %s798_s17, 3  ;;  %p563_p1 = scmp.lt.s32.totalorder %s798_s17, 2 }
  0x18   : > { %s891_s26 = sand.u32 1, %s786_s14   ;;  %s35_s28 = sadd.s32 1, %s794_s16 }
  0x19   : > { %p885_p13 = pnand %p518_p10, %p145_p11  ;;  %p895_p4 = pnand %p563_p1, %p74_p5 }
  0x1a   : > { %s521_s29 = sshll.u32 %s891_s26, 3  ;;  %p37_p6 = scmp.ge.s32.totalorder %s35_s28, 2 }
  0x1b   : > { %p547_p0 = pneg %p885_p13  ;;  %s1114_s0 = sld [smem:[#allocation14_spill]] }
  0x1d   : > { %p548_p2 = pnand %p547_p0, %p864_p3 }
  0x1f   : > { %p637_p11 = pneg %p548_p2 }
  0x21   : > { %s635_s5 = scalar_lea.hbm %s1114_s0, 16 }
  0x22   : > { %p636_p10 = scmp.ne.s32.totalorder %s1114_s0, %s635_s5  ;;  %p642_p5 = scmp.lt.u32.totalorder %s635_s5, %s1114_s0 }
  0x24   : > { %p638_p12 = pnand %p637_p11, %p636_p10 }
  0x26   : > { %p639_p9 = pneg %p638_p12 }
  0x28   : > { %p644_p1 = pnand %p642_p5, %p639_p9 }
  0x2a   : > { %647 = shalt.err (!%p644_p1)
}
  0x2b   : > { %s800_s10 = smov [#allocation2]   ;;  %s1127_s28 = smov (%p37_p6, %s35_s28), 0 }
  0x2c   : > { %550 = dma.hbm_to_smem (!%p548_p2), %s1114_s0, 16, %s800_s10, [#allocation5]  }
  0x2d   : > { %s535_s19 = sshll.u32 %s794_s16, 7  ;;  %s60_s30 = ssub.s32 %s794_s16, %s1127_s28 }
  0x2e   : > { %s1115_s1 = sld [smem:[#allocation15_spill]]  ;;  %p63_p9 = scmp.eq.s32.totalorder %s60_s30, 0 }
  0x2f   : > { %s171_s7 = scalar_lea.vmem [#allocation6], %s521_s29  ;;  %s168_s10 = scalar_lea.sflag [#allocation3], %s891_s26 }
  0x30   : > { %s179_s8 = sshll.u32 %s171_s7, 4  ;;  %p650_p0 = pneg %p895_p4  ;;  %s929_s8 = int_to_ptr.vmem [resolvable:$true] %s179_s8 }
  0x31   : > { %s934_s9 = scalar_select %p63_p9, %s786_s14, %s65_s20  }
  0x34   : > { %s925_s6 = scalar_lea.hbm %s1115_s1, %s535_s19  ;;  %s653_s30 = scalar_lea.hbm %s1115_s1, 256 }
  0x35   : > { %s648_s11 = scalar_lea.hbm %s925_s6, 128  ;;  %p654_p10 = scmp.lt.u32.totalorder %s925_s6, %s1115_s1 }
  0x36   : > { %p649_p12 = scmp.ne.s32.totalorder %s925_s6, %s648_s11  ;;  %p655_p11 = scmp.lt.u32.totalorder %s653_s30, %s648_s11 }
  0x37   : > { %p657_p1 = scmp.lt.u32.totalorder %s648_s11, %s925_s6 }
  0x38   : > { %p651_p2 = pnand %p650_p0, %p649_p12  ;;  %p656_p5 = por %p655_p11, %p654_p10 }
  0x3a   : > { %p652_p6 = pneg %p651_p2  ;;  %p658_p9 = por %p657_p1, %p656_p5 }
  0x3c   : > { %p659_p8 = pnand %p658_p9, %p652_p6 }
  0x3e   : > { %662 = shalt.err (!%p659_p8)
}
  0x3f   : > { %s663_s20 = scalar_lea.vmem %s929_s8, 128  ;;  %s801_s18 = smov [#allocation6]  }
  0x40   : > { %p664_p12 = scmp.ne.s32.totalorder %s929_s8, %s663_s20  ;;  %s668_s4 = sshll.u32 %s801_s18, 4  ;;  %s669_s4 = int_to_ptr.vmem [resolvable:$false] %s668_s4 }
  0x41   : > { %s670_s5 = scalar_lea.vmem %s669_s4, 256  ;;  %p671_p3 = scmp.lt.s32.totalorder %s929_s8, %s669_s4 }
  0x42   : > { %p666_p2 = pnand %p664_p12, %p650_p0  ;;  %p672_p10 = scmp.lt.s32.totalorder %s670_s5, %s663_s20 }
  0x44   : > { %p667_p7 = pneg %p666_p2  ;;  %p673_p11 = por %p672_p10, %p671_p3 }
  0x46   : > { %p674_p5 = pnand %p673_p11, %p667_p7 }
  0x48   : > { %677 = shalt.err (!%p674_p5)
}
  0x49   : > { %s802_s11 = smov 32   ;;  %s803_s30 = smov 2  }
  0x4a   : > { %554 = dma.hbm_to_vmem [thread:$0]  (!%p895_p4), %s925_s6, 128, %s929_s8, %s168_s10, %s802_s11, %s802_s11, %s803_s30  }
  0x4b   : > { %s972_s18 = scalar_lea.hbm %s1100_s2, %s535_s19  ;;  %s193_s4 = scalar_lea.vmem [#allocation7], %s521_s29 }
  0x4c   : > { %s201_s5 = sshll.u32 %s193_s4, 4  ;;  %s190_s0 = scalar_lea.sflag [#allocation8], %s891_s26  ;;  %s976_s5 = int_to_ptr.vmem [resolvable:$true] %s201_s5 }
  0x4d   : > { %s678_s1 = scalar_lea.hbm %s972_s18, 128  ;;  %s683_s19 = scalar_lea.hbm %s1100_s2, 256 }
  0x4e   : > { %p679_p3 = scmp.ne.s32.totalorder %s972_s18, %s678_s1  ;;  %p684_p6 = scmp.lt.u32.totalorder %s972_s18, %s1100_s2 }
  0x4f   : > { %p685_p1 = scmp.lt.u32.totalorder %s683_s19, %s678_s1  ;;  %p687_p12 = scmp.lt.u32.totalorder %s678_s1, %s972_s18 }
  0x50   : > { %p681_p7 = pnand %p679_p3, %p650_p0 }
  0x51   : > { %p686_p9 = por %p685_p1, %p684_p6 }
  0x52   : > { %p682_p8 = pneg %p681_p7 }
  0x53   : > { %p688_p2 = por %p687_p12, %p686_p9 }
  0x55   : > { %p689_p10 = pnand %p688_p2, %p682_p8 }
  0x57   : > { %692 = shalt.err (!%p689_p10)
}
  0x58   : > { %s693_s29 = scalar_lea.vmem %s976_s5, 128  ;;  %s804_s20 = smov [#allocation7]  }
  0x59   : > { %p694_p11 = scmp.ne.s32.totalorder %s976_s5, %s693_s29  ;;  %s698_s4 = sshll.u32 %s804_s20, 4  ;;  %s699_s4 = int_to_ptr.vmem [resolvable:$false] %s698_s4 }
  0x5a   : > { %s700_s6 = scalar_lea.vmem %s699_s4, 256  ;;  %p701_p7 = scmp.lt.s32.totalorder %s976_s5, %s699_s4 }
  0x5b   : > { %p696_p5 = pnand %p694_p11, %p650_p0  ;;  %p702_p6 = scmp.lt.s32.totalorder %s700_s6, %s693_s29 }
  0x5d   : > { %p697_p3 = pneg %p696_p5  ;;  %p703_p1 = por %p702_p6, %p701_p7 }
  0x5f   : > { %p704_p9 = pnand %p703_p1, %p697_p3 }
  0x61   : > { %707 = shalt.err (!%p704_p9)
}
  0x62   : > { %557 = dma.hbm_to_vmem [thread:$0]  (!%p895_p4), %s972_s18, 128, %s976_s5, %s190_s0, %s802_s11, %s802_s11, %s803_s30  }
  0x63   : > { %213 = sbr.rel (%p885_p13) target bundleno = 245 (0xf5), region = 32  ;;  %p1116_p0 = scmp.ne.s32.totalorder (!%p885_p13), %s1108_s21, 0 }
  0x6a   : > { %761 = dma.done.wait (%p1116_p0), [#allocation5], 16  }
  0x6b   : > { %763 = vsyncadd (%p1116_p0), [#allocation5], 4294967280  ;;  %s1014_s1 = sand.u32 1, %s782_s13   ;;  %p1117_p8 = scmp.ne.s32.totalorder %s1109_s22, 0 }
  0x6c   : > { %s529_s27 = sshll.u32 %s1014_s1, 3  ;;  %s220_s26 = scalar_lea.sflag [#allocation3], %s1014_s1 }
  0x6d   : > { %s223_s8 = scalar_lea.vmem [#allocation6], %s529_s27 }
  0x6e   : > { %765 = dma.done.wait (%p1117_p8), %s220_s26, 128  }
  0x6f   : > { %767 = vsyncadd (%p1117_p8), %s220_s26, 4294967168  ;;  %s229_s0 = scalar_lea.sflag [#allocation8], %s1014_s1  ;;  %s232_s25 = scalar_lea.vmem [#allocation7], %s529_s27 }
  0x70   : > { %769 = dma.done.wait (%p1117_p8), %s229_s0, 128  }
  0x71   : > { %771 = vsyncadd (%p1117_p8), %s229_s0, 4294967168 }
  0x72   : > { %237 = sfence }
  0x73   : > { %v261_v0 = vld [vmem:[%s223_s8] sm:$0x3]  ;;  %v262_v1 = vld [vmem:[%s223_s8 + $0x2] sm:$0x3]  ;;  %vm271_vm0 = vcmask 1041408   ;;  %s269_s21 = sld [smem:[#allocation2]] }
  0x74   : > { %v263_v2 = vld [vmem:[%s223_s8 + $0x4] sm:$0x3]  ;;  %v264_v3 = vld [vmem:[%s223_s8 + $0x6] sm:$0x3]  ;;  %v279_v4 = vmul.f32 %v261_v0, %v261_v0  ;;  %v280_v5 = vmul.f32 %v262_v1, %v262_v1  ;;  %v265_v6 = vld [vmem:[%s232_s25] sm:$0x3] }
  0x75   : > { %v266_v7 = vld [vmem:[%s232_s25 + $0x2] sm:$0x3]  ;;  %v281_v8 = vmul.f32 %v263_v2, %v263_v2  ;;  %v282_v9 = vmul.f32 %v264_v3, %v264_v3  ;;  %v267_v10 = vld [vmem:[%s232_s25 + $0x4] sm:$0x3]  ;;  %v272_v11 = vsel %vm271_vm0, %v261_v0, 0.0  ;;  %v273_v12 = vsel %vm271_vm0, %v262_v1, 0.0 }
  0x76   : > { %v310_v13 = vmul.f32 %v265_v6, %v265_v6  ;;  %v311_v14 = vmul.f32 %v266_v7, %v266_v7  ;;  %v268_v15 = vld [vmem:[%s232_s25 + $0x6] sm:$0x3]  ;;  %v274_v16 = vadd.f32 %v273_v12, %v272_v11  ;;  %v275_v17 = vsel %vm271_vm0, %v263_v2, 0.0  ;;  %s531_s22 = sld [smem:[#allocation2 + $0x1]]  ;;  %s532_s11 = sshll.u32 %s790_s15, 4 }
  0x77   : > { %v283_v18 = vsel %vm271_vm0, %v279_v4, 0.0  ;;  %v312_v19 = vmul.f32 %v267_v10, %v267_v10  ;;  %v277_v20 = vsel %vm271_vm0, %v264_v3, 0.0  ;;  %v284_v21 = vsel %vm271_vm0, %v280_v5, 0.0  ;;  %s259_s30 = scalar_lea.vmem [#allocation9], %s1014_s1  ;;  %s1049_s10 = scalar_lea.hbm %s1101_s3, %s532_s11 }
  0x78   : > { %v286_v22 = vsel %vm271_vm0, %v281_v8, 0.0  ;;  %v303_v23 = vsel %vm271_vm0, %v265_v6, 0.0  ;;  %v276_v24 = vadd.f32 %v275_v17, %v274_v16  ;;  %v285_v25 = vadd.f32 %v284_v21, %v283_v18  ;;  %s402_s18 = sshll.u32 %s259_s30, 4  ;;  %s389_s7 = scalar_lea.sflag [#allocation4], %s1014_s1  ;;  %s1051_s18 = int_to_ptr.vmem [resolvable:$true] %s402_s18 }
  0x79   : > { %v304_v26 = vsel %vm271_vm0, %v266_v7, 0.0  ;;  %v306_v27 = vsel %vm271_vm0, %v267_v10, 0.0  ;;  %v308_v29 = vsel %vm271_vm0, %v268_v15, 0.0  ;;  %v313_v30 = vmul.f32 %v268_v15, %v268_v15  ;;  %s708_s29 = scalar_lea.vmem %s1051_s18, 16  ;;  %p1118_p4 = scmp.ne.s32.totalorder %s1110_s23, 0 }
  0x7a   : > { %v305_v28 = vadd.f32 %v304_v26, %v303_v23  ;;  %v314_v31 = vsel %vm271_vm0, %v310_v13, 0.0  ;;  %v278_v32 = vadd.f32 %v277_v20, %v276_v24  ;;  %v287_v33 = vadd.f32 %v286_v22, %v285_v25  ;;  %p709_p13 = scmp.ne.s32.totalorder %s1051_s18, %s708_s29  ;;  %s805_s15 = smov [#allocation9]  }
  0x7b   : > { %v315_v34 = vsel %vm271_vm0, %v311_v14, 0.0  ;;  %v317_v35 = vsel %vm271_vm0, %v312_v19, 0.0  ;;  %v288_v36 = vsel %vm271_vm0, %v282_v9, 0.0  ;;  %v319_v44 = vsel %vm271_vm0, %v313_v30, 0.0  ;;  %s712_s20 = sshll.u32 %s805_s15, 4  ;;  %s713_s20 = int_to_ptr.vmem [resolvable:$false] %s712_s20 }
  0x7c   : > { %v307_v37 = vadd.f32 %v306_v27, %v305_v28  ;;  %v316_v38 = vadd.f32 %v315_v34, %v314_v31  ;;  %v290_v39 = vmul.f32 0.25, %v278_v32  ;;  %v289_v42 = vadd.f32 %v288_v36, %v287_v33  ;;  %p710_p12 = pnand %p709_p13, %p1118_p4  ;;  %s714_s4 = scalar_lea.vmem %s713_s20, 32 }
  0x7d   : > { %v334_v56 = vstv %s269_s21  ;;  %v336_v57 = vstv %s531_s22  ;;  %p715_p10 = scmp.lt.s32.totalorder %s1051_s18, %s713_s20  ;;  %p716_p11 = scmp.lt.s32.totalorder %s714_s4, %s708_s29 }
  0x7e   : > { %v309_v40 = vadd.f32 %v308_v29, %v307_v37  ;;  %v318_v41 = vadd.f32 %v317_v35, %v316_v38  ;;  %v291_v43 = vmul.f32 4.0, %v290_v39  ;;  %v335_v58 = vmul.f32 %v334_v56, %v290_v39  ;;  %p711_p2 = pneg %p710_p12 }
  0x7f   : > { %p717_p5 = por %p716_p11, %p715_p10 }
  0x80   : > { %v321_v45 = vmul.f32 0.25, %v309_v40  ;;  %v292_v46 = vmul.f32 %v291_v43, %v290_v39  ;;  %v320_v47 = vadd.f32 %v319_v44, %v318_v41 }
  0x81   : > { %p718_p3 = pnand %p717_p5, %p711_p2 }
  0x82   : > { %v322_v48 = vmul.f32 4.0, %v321_v45  ;;  %v293_v49 = vsub.f32 %v289_v42, %v292_v46  ;;  %v337_v59 = vmul.f32 %v336_v57, %v321_v45 }
  0x84   : > { %v323_v50 = vmul.f32 %v322_v48, %v321_v45  ;;  %v294_v51 = vmul.f32 0.33333334, %v293_v49  ;;  %v338_v63 = vsub.f32 %v335_v58, %v337_v59 }
  0x86   : > { %v324_v52 = vsub.f32 %v320_v47, %v323_v50  ;;  %v295_v53 = vadd.f32 1e-05, %v294_v51  ;;  %v340_v6 = vmul.f32 1.442695, %v338_v63  ;;  %vm339_vm7 = vcmp.gt.f32.partialorder %v338_v63, 20.0 }
  0x88   : > { %v325_v54 = vmul.f32 0.33333334, %v324_v52  ;;  %617 = vrsqrt.f32 %v295_v53  ;;  %vm298_vm1 = vcmp.eq.f32.partialorder %v295_v53, inf  ;;  %v301_v62 = vand.u32 2147483648, %v295_v53 }
  0x89   : > { %vm300_vm2 = vcmp.eq.f32.partialorder %v295_v53, 0.0 }
  0x8a   : > { %v326_v55 = vadd.f32 1e-05, %v325_v54 }
  0x8c   : > { %619 = vrsqrt.f32 %v326_v55  ;;  %vm329_vm3 = vcmp.eq.f32.partialorder %v326_v55, inf  ;;  %v332_v2 = vand.u32 2147483648, %v326_v55  ;;  %vm331_vm4 = vcmp.eq.f32.partialorder %v326_v55, 0.0 }
  0x8d   : > { %621 = vpow2.f32 %v340_v6  ;;  %v366_v15 = vsub.f32 %v295_v53, %v326_v55 }
  0x8f   : > { %v367_v18 = vand.u32 2147483647, %v366_v15 }
  0x92   : > { %v618_v60 = vpop.eup %617 }
  0x93   : > { %v297_v61 = vmul.f32 %v618_v60, %v295_v53 }
  0x95   : > { %v299_v1 = vsel %vm298_vm1, %v295_v53, %v297_v61 }
  0x96   : > { %v620_v0 = vpop.eup %619  ;;  %v302_v4 = vsel %vm300_vm2, %v301_v62, %v299_v1 }
  0x97   : > { %v328_v3 = vmul.f32 %v620_v0, %v326_v55  ;;  %v622_v10 = vpop.eup %621 }
  0x98   : > { %v342_v12 = vadd.f32 1.0, %v622_v10  ;;  %v345_v19 = vmul.f32 -0.5, %v622_v10  ;;  %v348_v25 = vand.u32 2147483647, %v622_v10 }
  0x99   : > { %v330_v5 = vsel %vm329_vm3, %v326_v55, %v328_v3 }
  0x9a   : > { %v333_v7 = vsel %vm331_vm4, %v332_v2, %v330_v5  ;;  %v346_v22 = vadd.f32 1.0, %v345_v19  ;;  %vm349_vm6 = vcmp.lt.f32.partialorder %v348_v25, 0.0004427343 }
  0x9b   : > { %v353_v8 = vadd.f32 %v333_v7, %v302_v4 }
  0x9c   : > { %v347_v29 = vmul.f32 %v622_v10, %v346_v22 }
  0x9d   : > { %v354_v9 = vmul.f32 1.442695, %v353_v8 }
  0x9f   : > { %623 = vpow2.f32 %v354_v9 }
  0xa9   : > { %v624_v11 = vpop.eup %623 }
  0xaa   : > { %v356_v13 = vadd.f32 1.0, %v624_v11  ;;  %v359_v14 = vmul.f32 -0.5, %v624_v11  ;;  %v362_v17 = vand.u32 2147483647, %v624_v11 }
  0xac   : > { %625 = vlog2.f32 %v356_v13  ;;  %v360_v16 = vadd.f32 1.0, %v359_v14  ;;  %vm363_vm5 = vcmp.lt.f32.partialorder %v362_v17, 0.0004427343 }
  0xad   : > { %627 = vlog2.f32 %v342_v12 }
  0xae   : > { %v361_v20 = vmul.f32 %v624_v11, %v360_v16  ;;  %629 = vlog2.f32 %v367_v18 }
  0xb6   : > { %v626_v21 = vpop.eup %625 }
  0xb7   : > { %v358_v23 = vmul.f32 0.6931472, %v626_v21  ;;  %v628_v24 = vpop.eup %627 }
  0xb8   : > { %v344_v28 = vmul.f32 0.6931472, %v628_v24  ;;  %v630_v31 = vpop.eup %629 }
  0xb9   : > { %v364_v26 = vsel %vm363_vm5, %v361_v20, %v358_v23  ;;  %v369_v33 = vmul.f32 0.6931472, %v630_v31 }
  0xba   : > { %v365_v27 = vmul.f32 %v364_v26, %v364_v26  ;;  %v350_v30 = vsel %vm349_vm6, %v347_v29, %v344_v28 }
  0xbb   : > { %v351_v32 = vsel %vm339_vm7, %v338_v63, %v350_v30 }
  0xbc   : > { %631 = vrcp.f32 %v365_v27  ;;  %v352_v34 = vmul.f32 %v351_v32, %v351_v32 }
  0xc6   : > { %v632_v35 = vpop.eup %631 }
  0xc7   : > { %v371_v36 = vmul.f32 %v632_v35, %v369_v33 }
  0xc9   : > { %v372_v37 = vsub.f32 %v352_v34, %v371_v36 }
  0xcb   : > { %633 = vrsqrt.f32 %v372_v37  ;;  %vm375_vm8 = vcmp.eq.f32.partialorder %v372_v37, inf  ;;  %v378_v39 = vand.u32 2147483648, %v372_v37  ;;  %vm377_vm9 = vcmp.eq.f32.partialorder %v372_v37, 0.0 }
  0xd5   : > { %v634_v38 = vpop.eup %633 }
  0xd6   : > { %v374_v40 = vmul.f32 %v634_v38, %v372_v37 }
  0xd8   : > { %v376_v41 = vsel %vm375_vm8, %v372_v37, %v374_v40 }
  0xd9   : > { %v379_v42 = vsel %vm377_vm9, %v378_v39, %v376_v41 }
  0xda   : > { %v380_v43 = vsel %vm271_vm0, %v379_v42, 0.0 }
  0xdb   : > { %v381_v44 = vrot.slane %v380_v43, 4 }
  0xdd   : > { %v382_v45 = vadd.f32 %v381_v44, %v380_v43 }
  0xdf   : > { %v383_v46 = vrot.slane %v382_v45, 2 }
  0xe1   : > { %v384_v47 = vadd.f32 %v383_v46, %v382_v45 }
  0xe3   : > { %v385_v48 = vrot.slane %v384_v47, 1 }
  0xe5   : > { %v386_v49 = vadd.f32 %v385_v48, %v384_v47 }
  0xe7   : > { %387 = vst [vmem:[%s259_s30] sm:$0x1] %v386_v49 }
  0xe8   : > { %721 = shalt.err (!%p718_p3)
}
  0xe9   : > { %s722_s6 = scalar_lea.hbm %s1049_s10, 16  ;;  %s726_s26 = scalar_lea.hbm %s1101_s3, 32 }
  0xea   : > { %p723_p7 = scmp.ne.s32.totalorder %s1049_s10, %s722_s6  ;;  %p727_p9 = scmp.lt.u32.totalorder %s1049_s10, %s1101_s3 }
  0xeb   : > { %p728_p0 = scmp.lt.u32.totalorder %s726_s26, %s722_s6  ;;  %p730_p13 = scmp.lt.u32.totalorder %s722_s6, %s1049_s10 }
  0xec   : > { %p724_p6 = pnand %p723_p7, %p1118_p4 }
  0xed   : > { %p729_p8 = por %p728_p0, %p727_p9 }
  0xee   : > { %p725_p1 = pneg %p724_p6 }
  0xef   : > { %p731_p12 = por %p730_p13, %p729_p8 }
  0xf1   : > { %p732_p2 = pnand %p731_p12, %p725_p1 }
  0xf3   : > { %735 = shalt.err (!%p732_p2)
}
  0xf4   : > { %545 = dma.vmem_to_hbm [thread:$0]  (%p1118_p4), %s1051_s18, 16, %s1049_s10, %s389_s7  }
  0xf5 PF: > { %s414_s25 = sand.u32 1, %s778_s12   ;;  %p1119_p10 = scmp.ne.s32.totalorder %s1111_s24, 0 }
  0xf6   : > { %p1120_p11 = scmp.ge.s32.totalorder %s798_s17, 2  ;;  %s415_s21 = scalar_lea.sflag [#allocation4], %s414_s25 }
  0xf8   : > { %p559_p5 = pnand %p1120_p11, %p1119_p10 }
  0xfa   : > { %773 = dma.done.wait (!%p559_p5), %s415_s21, 16  }
  0xfb   : > { %775 = vsyncadd (!%p559_p5), %s415_s21, 4294967280  ;;  %s23_s17 = sadd.s32 1, %s798_s17   ;;  %s1121_s12 = smov %s782_s13 }
  0xfc   : > { %p20_p3 = scmp.ge.s32.totalorder %s23_s17, 4   ;;  %s1122_s13 = smov %s786_s14 }
  0xfd   : > { %s1123_s14 = smov %s934_s9  ;;  %s1124_s15 = smov %s794_s16 }
  0xfe   : > { %s1125_s16 = smov %s1127_s28  ;;  %22 = sbr.rel (!%p20_p3) target bundleno = 12 (0xc), region = 95 }
 0x105   :  { %419 = vsyncpa [#allocation3], 1 }
 0x106   :  { %421 = vsyncpa [#allocation3 + $0x1], 1 }
 0x107   :  { %422 = vsyncpa [#allocation8], 1 }
 0x108   :  { %424 = vsyncpa [#allocation8 + $0x1], 1 }
 0x109   :  { %425 = vsyncpa [#allocation4], 1 }
 0x10a   :  { %427 = vsyncpa [#allocation4 + $0x1], 1 }
 0x10b   :  { %428 = vsyncpa [#allocation5], 1 }
 0x10c   :  { %430 = vsyncpa [#allocation5 + $0x1], 1 }

</bundles_post_ra>
